<compile_context>
chip_gen: v7x
topology: tpu7x:2x2x1
jax: 0.10.0
libtpu: 0.0.40
codegen_flags: <defaults>
</compile_context>

<pallas_src>
import functools

import jax
import jax.numpy as jnp
import numpy as np
from jax import lax
from jax.experimental import pallas as pl
from jax.experimental.pallas import tpu as pltpu

_MAX_BLOCK_ROWS = 512  # rows (= time*batch) per pipelined block / time chunk


@functools.lru_cache(maxsize=None)
def _vmem_limit_bytes():
    """Per-generation VMEM cap: ~48 MiB on v7x (64 MiB physical), ~96 MiB else."""
    try:
        cap = int(pltpu.get_tpu_info().vmem_capacity_bytes)
    except Exception:
        cap = 64 * 1024 * 1024
    return int(min(cap * 3 // 4, 96 * 1024 * 1024))


def _pick_time_block(T, N, max_rows=_MAX_BLOCK_ROWS):
    """Largest Tc dividing T with Tc*N <= max_rows and (Tc*N) % 8 == 0."""
    cap = max(1, max_rows // max(N, 1))
    for tc in range(min(T, cap), 0, -1):
        if T % tc == 0 and (tc * N) % 8 == 0:
            return tc
    # Fallback: single full-extent block (always layout-legal).
    return T


# ----------------------------------------------------------------------------
# CNN layer: temporal conv (k=3, "same" zero padding) + ReLU.
#
# Grid over row-blocks of the flattened (time*batch) axis.  The main (R, F)
# block and the two (N, F) halo rows (time step before / after the block) are
# all fed through standard BlockSpecs, so Pallas double-buffers every input and
# the output — no manual DMA, no padded copy of the activation.
#   w : (3, F, F) bf16 with w[k, c, o] == torch_conv.weight[o, c, k]
#   b : (1, F) f32
# ----------------------------------------------------------------------------
def _conv_relu_kernel(x_ref, left_ref, right_ref, w_ref, b_ref, o_ref, *, R, N):
    xc = x_ref[...].astype(jnp.bfloat16)                               # (R, F)
    x_prev = jnp.concatenate(                                          # tap t-1
        [left_ref[...].astype(jnp.bfloat16), xc[: R - N]], axis=0)
    x_next = jnp.concatenate(                                          # tap t+1
        [xc[N:], right_ref[...].astype(jnp.bfloat16)], axis=0)

    y = jnp.dot(x_prev, w_ref[0], preferred_element_type=jnp.float32)
    y = y + jnp.dot(xc, w_ref[1], preferred_element_type=jnp.float32)
    y = y + jnp.dot(x_next, w_ref[2], preferred_element_type=jnp.float32)
    y = y + b_ref[...]                                                 # (1, F)
    o_ref[...] = jnp.maximum(y, 0.0).astype(o_ref.dtype)


def conv_relu(x, w, b):
    """Conv1d(F, F, k=3, padding=1) over time + ReLU.  x: (T, N, F)."""
    T, N, F = x.shape
    Tc = _pick_time_block(T, N)
    nb = T // Tc
    R = Tc * N

    # One-time-step halos per block (zeros at the two sequence ends).  These are
    # nb*N*F elements — negligible vs. a full jnp.pad copy of the activation.
    zero = jnp.zeros((1, N, F), x.dtype)
    left = jnp.concatenate([zero, x[Tc - 1:T - 1:Tc]], axis=0)          # (nb, N, F)
    right = jnp.concatenate([x[Tc::Tc], zero], axis=0)                  # (nb, N, F)
    x_flat = x.reshape(T * N, F)

    out_flat = pl.pallas_call(
        functools.partial(_conv_relu_kernel, R=R, N=N),
        out_shape=jax.ShapeDtypeStruct((T * N, F), x.dtype),
        grid=(nb,),
        in_specs=[
            pl.BlockSpec((R, F), lambda i: (i, 0)),
            pl.BlockSpec((None, N, F), lambda i: (i, 0, 0)),
            pl.BlockSpec((None, N, F), lambda i: (i, 0, 0)),
            pl.BlockSpec((3, F, F), lambda i: (0, 0, 0)),
            pl.BlockSpec((1, F), lambda i: (0, 0)),
        ],
        out_specs=pl.BlockSpec((R, F), lambda i: (i, 0)),
        compiler_params=pltpu.CompilerParams(
            dimension_semantics=("parallel",),
            vmem_limit_bytes=_vmem_limit_bytes(),
        ),
    )(x_flat, left, right, w, b)
    return out_flat.reshape(T, N, F)


# ----------------------------------------------------------------------------
# RNN layer: bidirectional LSTM, hidden = F // 2, gate order [i, f, o, g].
#
# grid = (direction, time-chunk).  Per chunk: one big bf16 MXU matmul computes
# the input projection gx for the whole chunk (f32 accumulation), then a serial
# fori_loop runs the recurrence (h @ Whh per step) with the (h, c) state carried
# in VMEM scratch across chunks.  Each direction writes its own (T, N, H) slab;
# the wrapper concatenates [fwd | bwd] -> (T, N, 2H).
#   wih : (2, F, 4H) bf16   whh : (2, H, 4H) bf16   b : (2, 1, 4H) f32
# ----------------------------------------------------------------------------
def _bilstm_kernel(x_ref, wih_ref, whh_ref, b_ref, o_ref, gx_ref, h_ref, c_ref,
                   *, Tc, H, unroll):
    d = pl.program_id(0)     # direction: 0 = forward, 1 = backward
    ci = pl.program_id(1)    # chunk index within this direction's sweep
    N = x_ref.shape[1]

    # Reset the carried recurrent state at the start of each direction's sweep.
    @pl.when(ci == 0)
    def _():
        h_ref[d] = jnp.zeros((N, H), jnp.float32)
        c_ref[d] = jnp.zeros((N, H), jnp.float32)

    # Hoisted per-chunk input projection (bf16 MXU, f32 accumulation).
    xv = x_ref[...].astype(jnp.bfloat16).reshape(Tc * N, x_ref.shape[2])
    gx = jnp.dot(xv, wih_ref[...], preferred_element_type=jnp.float32)
    gx_ref[...] = gx.reshape(Tc, N, 4 * H) + b_ref[...]

    whh = whh_ref[...]       # (H, 4H) bf16, hoisted out of the serial loop

    def step(tl, carry):
        h, c = carry
        t = jnp.where(d == 0, tl, Tc - 1 - tl)       # fwd: 0..Tc-1, bwd: Tc-1..0
        gates = gx_ref[t] + jnp.dot(h.astype(jnp.bfloat16), whh,
                                    preferred_element_type=jnp.float32)
        sg = jax.nn.sigmoid(gates[:, : 3 * H])       # i, f, o in one EUP pass
        i_g = sg[:, 0 * H:1 * H]
        f_g = sg[:, 1 * H:2 * H]
        o_g = sg[:, 2 * H:3 * H]
        g_g = jnp.tanh(gates[:, 3 * H:4 * H])
        c_new = f_g * c + i_g * g_g                  # f32 cell state
        h_new = o_g * jnp.tanh(c_new)
        o_ref[t] = h_new.astype(o_ref.dtype)
        return (h_new, c_new)

    h_out, c_out = lax.fori_loop(0, Tc, step, (h_ref[d], c_ref[d]), unroll=unroll)
    h_ref[d] = h_out
    c_ref[d] = c_out


def bilstm(x, p):
    """Bidirectional LSTM, hidden = F//2, output (T, N, F).  x: (T, N, F)."""
    T, N, F = x.shape
    assert F % 2 == 0, "num_features must be even for the bidirectional RNN"
    H = F // 2
    Tc = _pick_time_block(T, N)
    C = T // Tc
    unroll = 4 if Tc % 4 == 0 else (2 if Tc % 2 == 0 else 1)

    def x_map(d, c):
        # forward consumes chunks 0..C-1, backward C-1..0
        return (d * (C - 1) + (1 - 2 * d) * c, 0, 0)

    def o_map(d, c):
        return (d, d * (C - 1) + (1 - 2 * d) * c, 0, 0)

    out = pl.pallas_call(
        functools.partial(_bilstm_kernel, Tc=Tc, H=H, unroll=unroll),
        out_shape=jax.ShapeDtypeStruct((2, T, N, H), x.dtype),
        grid=(2, C),
        in_specs=[
            pl.BlockSpec((Tc, N, F), x_map),
            pl.BlockSpec((None, F, 4 * H), lambda d, c: (d, 0, 0)),
            pl.BlockSpec((None, H, 4 * H), lambda d, c: (d, 0, 0)),
            pl.BlockSpec((None, 1, 4 * H), lambda d, c: (d, 0, 0)),
        ],
        out_specs=pl.BlockSpec((None, Tc, N, H), o_map),
        scratch_shapes=[
            pltpu.VMEM((Tc, N, 4 * H), jnp.float32),   # per-chunk gate pre-acts
            pltpu.VMEM((2, N, H), jnp.float32),        # carried h (per direction)
            pltpu.VMEM((2, N, H), jnp.float32),        # carried c (per direction)
        ],
        compiler_params=pltpu.CompilerParams(
            dimension_semantics=("parallel", "arbitrary"),
            vmem_limit_bytes=_vmem_limit_bytes(),
        ),
    )(x, p["wih"], p["whh"], p["b"])

    # (2, T, N, H) -> (T, N, 2H): [h_fwd | h_bwd], matching nn.LSTM(bidirectional).
    # TODO(synk): with H padded to 128 lanes both directions could write one
    # fused output block in-kernel and this concat would disappear.
    return jnp.concatenate([out[0], out[1]], axis=-1)


# ----------------------------------------------------------------------------
# Parameter init (deterministic, synthetic) and the encoder forward.
# Matmul weights stored bf16 (f32 accumulation in-kernel); biases f32.
# ----------------------------------------------------------------------------
def init_cnn_params(key, F):
    k1, k2 = jax.random.split(key)
    return {
        "w": (0.2 * jax.random.normal(k1, (3, F, F), jnp.float32)).astype(jnp.bfloat16),
        "b": 0.2 * jax.random.normal(k2, (1, F), jnp.float32),
    }


def init_rnn_params(key, F):
    assert F % 2 == 0
    H = F // 2
    k1, k2, k3 = jax.random.split(key, 3)
    return {
        # Leading axis = direction (0 fwd, 1 bwd); gate columns packed [i, f, o, g].
        "wih": (0.2 * jax.random.normal(k1, (2, F, 4 * H), jnp.float32)).astype(jnp.bfloat16),
        "whh": (0.2 * jax.random.normal(k2, (2, H, 4 * H), jnp.float32)).astype(jnp.bfloat16),
        "b": 0.2 * jax.random.normal(k3, (2, 1, 4 * H), jnp.float32),  # b_ih + b_hh
    }


def init_encoder(key, F, stripping):
    params = []
    for i, layer in enumerate(stripping):
        k = jax.random.fold_in(key, i)
        if layer == "CNN":
            params.append(init_cnn_params(k, F))
        elif layer == "RNN":
            params.append(init_rnn_params(k, F))
        else:
            raise ValueError(f"Unknown layer type: {layer}")
    return params


def cnn_rnn_encoder(x, params, stripping):
    x = x.astype(jnp.bfloat16)   # bf16 inter-layer activations (halved HBM traffic)
    for layer, p in zip(stripping, params):
        x = conv_relu(x, p["w"], p["b"]) if layer == "CNN" else bilstm(x, p)
    return x.astype(jnp.float32)


# ----------------------------------------------------------------------------
# Pure-JAX references (f32) for numerical checks.
# ----------------------------------------------------------------------------
def conv_relu_ref(x, w, b):
    xpad = jnp.pad(x.astype(jnp.float32), ((1, 1), (0, 0), (0, 0)))
    w32 = w.astype(jnp.float32)
    y = (jnp.einsum("tnf,fo->tno", xpad[:-2], w32[0])
         + jnp.einsum("tnf,fo->tno", xpad[1:-1], w32[1])
         + jnp.einsum("tnf,fo->tno", xpad[2:], w32[2])
         + b.astype(jnp.float32))
    return jnp.maximum(y, 0.0)


def bilstm_ref(x, p):
    T, N, F = x.shape
    H = F // 2
    wih = p["wih"].astype(jnp.float32)
    whh = p["whh"].astype(jnp.float32)
    b = p["b"].astype(jnp.float32)
    xf = x.astype(jnp.float32)

    def run(d, xs):
        def step(carry, xt):
            h, c = carry
            g = xt @ wih[d] + h @ whh[d] + b[d]
            i = jax.nn.sigmoid(g[:, :H])
            f = jax.nn.sigmoid(g[:, H:2 * H])
            o = jax.nn.sigmoid(g[:, 2 * H:3 * H])
            gg = jnp.tanh(g[:, 3 * H:])
            c = f * c + i * gg
            h = o * jnp.tanh(c)
            return (h, c), h
        init = (jnp.zeros((N, H), jnp.float32), jnp.zeros((N, H), jnp.float32))
        return lax.scan(step, init, xs)[1]

    h_f = run(0, xf)
    h_b = run(1, xf[::-1])[::-1]
    return jnp.concatenate([h_f, h_b], axis=-1)


def cnn_rnn_encoder_ref(x, params, stripping):
    y = x.astype(jnp.float32)
    for layer, p in zip(stripping, params):
        y = conv_relu_ref(y, p["w"], p["b"]) if layer == "CNN" else bilstm_ref(y, p)
    return y


if __name__ == "__main__":
    key = jax.random.PRNGKey(0)
    T, N, F = 96, 8, 32            # time, batch, num_features (2 blocks / chunks)
    stripping = ["CNN", "RNN", "CNN", "RNN"]

    kx, kp = jax.random.split(key)
    x = jax.random.normal(kx, (T, N, F), jnp.float32)
    params = init_encoder(kp, F, stripping)

    # Per-layer numerical checks (exercise the multi-block conv pipeline and the
    # multi-chunk, carried-state biLSTM paths against pure-JAX references).
    x_bf16 = x.astype(jnp.bfloat16)
    y_cnn = jax.block_until_ready(conv_relu(x_bf16, params[0]["w"], params[0]["b"]))
    np.testing.assert_allclose(
        np.asarray(y_cnn.astype(jnp.float32)),
        np.asarray(conv_relu_ref(x, params[0]["w"], params[0]["b"])),
        atol=8e-2, rtol=8e-2)

    y_rnn = jax.block_until_ready(bilstm(x_bf16, params[1]))
    np.testing.assert_allclose(
        np.asarray(y_rnn.astype(jnp.float32)),
        np.asarray(bilstm_ref(x, params[1])),
        atol=8e-2, rtol=8e-2)

    # Full encoder forward.
    fwd = jax.jit(functools.partial(cnn_rnn_encoder, stripping=stripping))
    out = jax.block_until_ready(fwd(x, params))
    assert out.shape == (T, N, F), out.shape
    assert bool(jnp.all(jnp.isfinite(out)))
    np.testing.assert_allclose(
        np.asarray(out),
        np.asarray(cnn_rnn_encoder_ref(x, params, stripping)),
        atol=2.5e-1, rtol=2.5e-1)
    print("KERNEL_OK")
</pallas_src>

<mosaic_0001>
module attributes {stable_mosaic.version = 11 : i64} {
  func.func @_conv_relu_kernel(%arg0: i32, %arg1: memref<384x32xbf16, #tpu.memory_space<vmem>>, %arg2: memref<1x8x32xbf16, #tpu.memory_space<vmem>>, %arg3: memref<1x8x32xbf16, #tpu.memory_space<vmem>>, %arg4: memref<3x32x32xbf16, #tpu.memory_space<vmem>>, %arg5: memref<1x32xf32, #tpu.memory_space<vmem>>, %arg6: memref<384x32xbf16, #tpu.memory_space<vmem>>) attributes {dimension_semantics = [#tpu.dimension_semantics<parallel>], iteration_bounds = array<i64: 2>, scalar_prefetch = 0 : i64, scratch_operands = 0 : i64, tpu.core_type = #tpu.core_type<tc>, window_params = [{transform_indices = @transform_0, window_bounds = array<i64: 384, 32>}, {transform_indices = @transform_1, window_bounds = array<i64: 1, 8, 32>}, {transform_indices = @transform_2, window_bounds = array<i64: 1, 8, 32>}, {pipeline_mode = #tpu.pipeline_mode<synchronous>, transform_indices = @transform_3, window_bounds = array<i64: 3, 32, 32>}, {pipeline_mode = #tpu.pipeline_mode<synchronous>, transform_indices = @transform_4, window_bounds = array<i64: 1, 32>}, {transform_indices = @transform_5, window_bounds = array<i64: 384, 32>}]} {
    %c0 = arith.constant 0 : index
    %c0_0 = arith.constant 0 : index
    %0 = vector.load %arg1[%c0, %c0_0] : memref<384x32xbf16, #tpu.memory_space<vmem>>, vector<384x32xbf16>
    %c0_1 = arith.constant 0 : index
    %c0_2 = arith.constant 0 : index
    %c0_3 = arith.constant 0 : index
    %1 = vector.load %arg2[%c0_1, %c0_2, %c0_3] : memref<1x8x32xbf16, #tpu.memory_space<vmem>>, vector<1x8x32xbf16>
    %2 = vector.shape_cast %1 : vector<1x8x32xbf16> to vector<8x32xbf16>
    %3 = vector.extract_strided_slice %0 {offsets = [0, 0], sizes = [376, 32], strides = [1, 1]} : vector<384x32xbf16> to vector<376x32xbf16>
    %4 = tpu.concatenate %2, %3 in 0 : vector<8x32xbf16>, vector<376x32xbf16> -> vector<384x32xbf16>
    %5 = vector.extract_strided_slice %0 {offsets = [8, 0], sizes = [376, 32], strides = [1, 1]} : vector<384x32xbf16> to vector<376x32xbf16>
    %c0_4 = arith.constant 0 : index
    %c0_5 = arith.constant 0 : index
    %c0_6 = arith.constant 0 : index
    %6 = vector.load %arg3[%c0_4, %c0_5, %c0_6] : memref<1x8x32xbf16, #tpu.memory_space<vmem>>, vector<1x8x32xbf16>
    %7 = vector.shape_cast %6 : vector<1x8x32xbf16> to vector<8x32xbf16>
    %8 = tpu.concatenate %5, %7 in 0 : vector<376x32xbf16>, vector<8x32xbf16> -> vector<384x32xbf16>
    %c0_7 = arith.constant 0 : index
    %c0_8 = arith.constant 0 : index
    %c0_9 = arith.constant 0 : index
    %9 = vector.load %arg4[%c0_7, %c0_8, %c0_9] : memref<3x32x32xbf16, #tpu.memory_space<vmem>>, vector<1x32x32xbf16>
    %10 = vector.shape_cast %9 : vector<1x32x32xbf16> to vector<32x32xbf16>
    %cst = arith.constant dense<0.000000e+00> : vector<384x32xf32>
    %11 = tpu.matmul %4, %10, %cst {dimension_numbers = #tpu.dot_dimension_numbers<[1], [0], [0], [1], [0, 0, 1, 1], [], []>} : vector<384x32xbf16>, vector<32x32xbf16>, vector<384x32xf32> -> vector<384x32xf32>
    %c1 = arith.constant 1 : index
    %c0_10 = arith.constant 0 : index
    %c0_11 = arith.constant 0 : index
    %12 = vector.load %arg4[%c1, %c0_10, %c0_11] : memref<3x32x32xbf16, #tpu.memory_space<vmem>>, vector<1x32x32xbf16>
    %13 = vector.shape_cast %12 : vector<1x32x32xbf16> to vector<32x32xbf16>
    %cst_12 = arith.constant dense<0.000000e+00> : vector<384x32xf32>
    %14 = tpu.matmul %0, %13, %cst_12 {dimension_numbers = #tpu.dot_dimension_numbers<[1], [0], [0], [1], [0, 0, 1, 1], [], []>} : vector<384x32xbf16>, vector<32x32xbf16>, vector<384x32xf32> -> vector<384x32xf32>
    %15 = arith.addf %11, %14 : vector<384x32xf32>
    %c2 = arith.constant 2 : index
    %c0_13 = arith.constant 0 : index
    %c0_14 = arith.constant 0 : index
    %16 = vector.load %arg4[%c2, %c0_13, %c0_14] : memref<3x32x32xbf16, #tpu.memory_space<vmem>>, vector<1x32x32xbf16>
    %17 = vector.shape_cast %16 : vector<1x32x32xbf16> to vector<32x32xbf16>
    %cst_15 = arith.constant dense<0.000000e+00> : vector<384x32xf32>
    %18 = tpu.matmul %8, %17, %cst_15 {dimension_numbers = #tpu.dot_dimension_numbers<[1], [0], [0], [1], [0, 0, 1, 1], [], []>} : vector<384x32xbf16>, vector<32x32xbf16>, vector<384x32xf32> -> vector<384x32xf32>
    %19 = arith.addf %15, %18 : vector<384x32xf32>
    %c0_16 = arith.constant 0 : index
    %c0_17 = arith.constant 0 : index
    %20 = vector.load %arg5[%c0_16, %c0_17] : memref<1x32xf32, #tpu.memory_space<vmem>>, vector<1x32xf32>
    %21 = vector.broadcast %20 : vector<1x32xf32> to vector<384x32xf32>
    %22 = arith.addf %19, %21 : vector<384x32xf32>
    %cst_18 = arith.constant 0.000000e+00 : f32
    %23 = vector.broadcast %cst_18 : f32 to vector<384x32xf32>
    %24 = arith.maximumf %22, %23 : vector<384x32xf32>
    %25 = arith.truncf %24 : vector<384x32xf32> to vector<384x32xbf16>
    %c0_19 = arith.constant 0 : index
    %c0_20 = arith.constant 0 : index
    %26 = vector.load %arg6[%c0_19, %c0_20] : memref<384x32xbf16, #tpu.memory_space<vmem>>, vector<384x32xbf16>
    tpu.vector_store %arg6[%c0_19, %c0_20], %25 {strides = array<i32>} : memref<384x32xbf16, #tpu.memory_space<vmem>>, vector<384x32xbf16>,
    return
  }
  func.func @transform_0(%arg0: i32) -> (i32, i32) {
    %c0_i32 = arith.constant 0 : i32
    %c0_i32_0 = arith.constant 0 : i32
    return %arg0, %c0_i32 : i32, i32
  }
  func.func @transform_1(%arg0: i32) -> (i32, i32, i32) {
    %c0_i32 = arith.constant 0 : i32
    %c0_i32_0 = arith.constant 0 : i32
    %c0_i32_1 = arith.constant 0 : i32
    return %arg0, %c0_i32, %c0_i32_0 : i32, i32, i32
  }
  func.func @transform_2(%arg0: i32) -> (i32, i32, i32) {
    %c0_i32 = arith.constant 0 : i32
    %c0_i32_0 = arith.constant 0 : i32
    %c0_i32_1 = arith.constant 0 : i32
    return %arg0, %c0_i32, %c0_i32_0 : i32, i32, i32
  }
  func.func @transform_3(%arg0: i32) -> (i32, i32, i32) {
    %c0_i32 = arith.constant 0 : i32
    %c0_i32_0 = arith.constant 0 : i32
    %c0_i32_1 = arith.constant 0 : i32
    %c0_i32_2 = arith.constant 0 : i32
    return %c0_i32, %c0_i32_0, %c0_i32_1 : i32, i32, i32
  }
  func.func @transform_4(%arg0: i32) -> (i32, i32) {
    %c0_i32 = arith.constant 0 : i32
    %c0_i32_0 = arith.constant 0 : i32
    %c0_i32_1 = arith.constant 0 : i32
    return %c0_i32, %c0_i32_0 : i32, i32
  }
  func.func @transform_5(%arg0: i32) -> (i32, i32) {
    %c0_i32 = arith.constant 0 : i32
    %c0_i32_0 = arith.constant 0 : i32
    return %arg0, %c0_i32 : i32, i32
  }
}

</mosaic_0001>

<bundles_post_ra>
// kernel: tpu_custom_call.1
= control target key start
LH: loop header
LB: loop body
LE: loop exit
PB: predicated region body
PF: predicated region fallthrough
CT: control target
= control target key end

     0   :  { %s2491_s18 = smov 0   ;;  %s2909_s0 = inlined_call_operand.vmem [shape: bf16[768,32], index: 0, kind: input, shape index: {}]   ;;  %s2910_s1 = inlined_call_operand.vmem [shape: bf16[2,8,32], index: 1, kind: input, shape index: {}]   ;;  %s2911_s2 = inlined_call_operand.vmem [shape: bf16[2,8,32], index: 2, kind: input, shape index: {}]   ;;  %s2912_s3 = inlined_call_operand.vmem [shape: bf16[3,32,32], index: 3, kind: input, shape index: {}]   ;;  %s2913_s4 = inlined_call_operand.vmem [shape: f32[1,32], index: 4, kind: input, shape index: {}]   ;;  %s2914_s5 = inlined_call_operand.vmem [shape: bf16[768,32], index: 5, kind: output, shape index: {}]  }
   0x1 LB: > { %s1811_s19 = sadd.s32 4294967295, %s2459_s18   ;;  %p1815_p0 = scmp.ge.s32.totalorder %s2459_s18, 1  ;;  %s2459_s18 = sphi %s2491_s18, %s15_s18  }
   0x2   : > { %p206_p1 = scmp.lt.s32.totalorder %s2459_s18, 3 }
   0x4   : > { %p207_p2 = pnand %p1815_p0, %p206_p1 }
   0x5   : > { %v2397_v0 = vld [vmem:[%s2912_s3 + $0x10] sm:$0xff] (!%p207_p2)   ;;  %s242_s22 = smul.u32 (!%p207_p2), 48, %s1811_s19  ;;  %v2398_v1 = vld [vmem:[%s2912_s3] sm:$0xff] (!%p207_p2)   ;;  %v2399_v2 = vld [vmem:[%s2912_s3 + $0x18] sm:$0xff] (!%p207_p2)   ;;  %p248_p4 = scmp.lt.s32.totalorder (!%p207_p2), %s1811_s19, 1  ;;  %vm489_vm0 = vcmask (!%p207_p2), 261120  }
   0x6   : > { %210 = sbr.rel (%p207_p2) target bundleno = 381 (0x17d), region = 40  ;;  %2133 = vmatprep.subr.bf16.mxu1 (!%p207_p2), %v2397_v0  ;;  %2185 = vmatprep.subr.bf16.mxu0 (!%p207_p2), %v2398_v1  ;;  %v2400_v3 = vld [vmem:[%s2912_s3 + $0x8] sm:$0xff] (!%p207_p2)   ;;  %v2406_v4 = vld [vmem:[%s2912_s3 + $0x20] sm:$0xff] (!%p207_p2)   ;;  %vm430_vm1 = vcmask (!%p207_p2), 1043456   ;;  %vm1682_vm2 = vcmask (!%p207_p2), 257024  }
   0x7   : > { %p243_p3 = scmp.lt.s32.totalorder (!%p207_p2), %s242_s22, 95  ;;  %2134 = vmatpush3.bf16.msra.mxu1 (!%p207_p2), %v2397_v0  ;;  %2186 = vmatpush3.bf16.msra.mxu0 (!%p207_p2), %v2398_v1  ;;  %v2418_v19 = vld [vmem:[%s2912_s3 + $0x28] sm:$0xff] (!%p207_p2)  }
   0x8   : > { %2135 = vmatprep.subr.bf16.mxu1 (!%p207_p2), %v2399_v2  ;;  %2187 = vmatprep.subr.bf16.mxu0 (!%p207_p2), %v2400_v3 }
   0xb   : > { %2136 = vmatpush3.bf16.msra.mxu1 (!%p207_p2), %v2399_v2  ;;  %2188 = vmatpush3.bf16.msra.mxu0 (!%p207_p2), %v2400_v3 }
   0xc   : > { %2289 = vmatprep.subr.bf16.mxu1 (!%p207_p2), %v2398_v1  ;;  %2237 = vmatprep.subr.bf16.mxu0 (!%p207_p2), %v2406_v4 }
   0xd   : > { %s2916_s22 = smov (!%p243_p3, %s242_s22), 95  ;;  %s2918_s19 = smov (!%p248_p4, %s1811_s19), 1 }
   0xe   : > { %s1816_s6 = sshll.u32 %s2916_s22, 2  ;;  %s1817_s10 = sshll.u32 %s2918_s19, 2 }
   0xf   : > { %s2522_s9 = scalar_lea.vmem %s2909_s0, %s1816_s6  ;;  %s251_s13 = scalar_lea.vmem %s2910_s1, %s1817_s10 }
  0x10   : > { %v263_v5 = vld [vmem:[%s2522_s9] sm:$0xf]  ;;  %v264_v6 = vld [vmem:[%s2522_s9 + $0x4] sm:$0xf]  ;;  %v265_v7 = vld [vmem:[%s2522_s9 + $0x8] sm:$0xf]  ;;  %s2537_s16 = scalar_lea.vmem %s2911_s2, %s1817_s10  ;;  %s2747_s25 = scalar_lea.vmem %s2914_s5, %s1816_s6 }
  0x11   : > { %v266_v8 = vld [vmem:[%s2522_s9 + $0xc] sm:$0xf]  ;;  %v1820_v9 = vcombine.low %v263_v5, %v263_v5  ;;  %v1850_v10 = vcombine.low %v263_v5, %v264_v6  ;;  %v267_v11 = vld [vmem:[%s2522_s9 + $0x10] sm:$0xf]  ;;  %v2529_v12 = vcombine.low %v264_v6, %v265_v7  ;;  %v268_v14 = vld [vmem:[%s2522_s9 + $0x14] sm:$0xf] }
  0x12   : > { %v1851_v13 = vcombine.low %v265_v7, %v266_v8  ;;  %v311_v15 = vld [vmem:[%s251_s13] sm:$0xf]  ;;  %v1852_v16 = vcombine.low %v267_v11, %v268_v14  ;;  %v2541_v17 = vcombine.low %v266_v8, %v267_v11  ;;  %v269_v20 = vld [vmem:[%s2522_s9 + $0x18] sm:$0xf]  ;;  %v270_v21 = vld [vmem:[%s2522_s9 + $0x1c] sm:$0xf] }
  0x13   : > { %2137 = vmatprep.mubr.msk.bf16.mxu1 %vm489_vm0, %v1850_v10  ;;  %v433_v18 = vsel %vm430_vm1, %v311_v15, %v1820_v9  ;;  %v271_v22 = vld [vmem:[%s2522_s9 + $0x20] sm:$0xf]  ;;  %v272_v23 = vld [vmem:[%s2522_s9 + $0x24] sm:$0xf]  ;;  %v1853_v24 = vcombine.low %v269_v20, %v270_v21  ;;  %v2558_v26 = vcombine.low %v268_v14, %v269_v20  ;;  %v273_v28 = vld [vmem:[%s2522_s9 + $0x28] sm:$0xf] }
  0x14   : > { %2138 = vmatmul.mubr.msk.bf16.vlgmr.msra.gmra.mrb[0].mxu1 %vm489_vm0, %v1851_v13  ;;  %2189 = vmatprep.mubr.msk.bf16.mxu0 %vm489_vm0, %v433_v18  ;;  %v1854_v25 = vcombine.low %v271_v22, %v272_v23  ;;  %v2560_v27 = vcombine.low %v270_v21, %v271_v22  ;;  %v274_v29 = vld [vmem:[%s2522_s9 + $0x2c] sm:$0xf]  ;;  %v275_v30 = vld [vmem:[%s2522_s9 + $0x30] sm:$0xf]  ;;  %v276_v31 = vld [vmem:[%s2522_s9 + $0x34] sm:$0xf]  ;;  %v2576_v36 = vcombine.low %v272_v23, %v273_v28 }
  0x15   : > { %2291 = vmatpush3.bf16.msra.mxu1 %v2398_v1  ;;  %2190 = vmatmul.mubr.msk.bf16.vlgmr.msra.gmra.mrb[0].mxu0 %vm489_vm0, %v2529_v12  ;;  %v2405_v32 = vld [vmem:[%s2537_s16] ss:$0 sps:$4 sm:$0xff]   ;;  %v1855_v33 = vcombine.low %v273_v28, %v274_v29  ;;  %v1856_v34 = vcombine.low %v275_v30, %v276_v31  ;;  %v2574_v35 = vld [vmem:[%s2522_s9 + $0xbc] sm:$0xf]  ;;  %v2580_v38 = vcombine.low %v274_v29, %v275_v30  ;;  %v277_v40 = vld [vmem:[%s2522_s9 + $0x38] sm:$0xf] }
  0x16   : > { %2141 = vmatprep.mubr.msk.bf16.mxu1 %vm489_vm0, %v1852_v16  ;;  %2238 = vmatpush3.bf16.msra.mxu0 %v2406_v4  ;;  %v1844_v37 = vcombine.low %v2574_v35, %v2574_v35  ;;  %v278_v41 = vld [vmem:[%s2522_s9 + $0x3c] sm:$0xf]  ;;  %v279_v42 = vld [vmem:[%s2522_s9 + $0x40] sm:$0xf]  ;;  %v280_v43 = vld [vmem:[%s2522_s9 + $0x44] sm:$0xf]  ;;  %v1827_v46 = vcombine.low %v276_v31, %v277_v40 }
  0x17   : > { %2193 = vmatprep.mubr.msk.bf16.mxu0 %vm489_vm0, %v2541_v17  ;;  %2239 = vmatprep.subr.bf16.mxu0 %v2418_v19  ;;  %v1857_v44 = vcombine.low %v277_v40, %v278_v41  ;;  %v1858_v45 = vcombine.low %v279_v42, %v280_v43  ;;  %v2595_v47 = vcombine.low %v278_v41, %v279_v42  ;;  %v281_v48 = vld [vmem:[%s2522_s9 + $0x48] sm:$0xf]  ;;  %v282_v49 = vld [vmem:[%s2522_s9 + $0x4c] sm:$0xf]  ;;  %v283_v50 = vld [vmem:[%s2522_s9 + $0x50] sm:$0xf] }
  0x18   : > { %2290 = vmatprep.subr.bf16.mxu1 %v2400_v3  ;;  %v2584_v39 = vsel %vm430_vm1, %v1844_v37, %v2405_v32  ;;  %v284_v51 = vld [vmem:[%s2522_s9 + $0x54] sm:$0xf]  ;;  %v1859_v52 = vcombine.low %v281_v48, %v282_v49  ;;  %v1829_v54 = vcombine.low %v280_v43, %v281_v48  ;;  %v2606_v55 = vcombine.low %v282_v49, %v283_v50  ;;  %v285_v56 = vld [vmem:[%s2522_s9 + $0x58] sm:$0xf]  ;;  %v2612_v57 = vld [vmem:[%s2522_s9 + $0x5c] sm:$0xf] }
  0x19   : > { %2292 = vmatpush3.bf16.msra.mxu1 %v2400_v3  ;;  %v1860_v53 = vcombine.low %v283_v50, %v284_v51  ;;  %v287_v58 = vld [vmem:[%s2522_s9 + $0x60] sm:$0xf]  ;;  %v288_v59 = vld [vmem:[%s2522_s9 + $0x64] sm:$0xf]  ;;  %v1861_v60 = vcombine.low %v285_v56, %v2612_v57  ;;  %v1831_v62 = vcombine.low %v284_v51, %v285_v56  ;;  %v289_v63 = vld [vmem:[%s2522_s9 + $0x68] sm:$0xf] }
  0x1a   : > { %2240 = vmatpush3.bf16.msra.mxu0 %v2418_v19  ;;  %v1862_v61 = vcombine.low %v287_v58, %v288_v59  ;;  %v290_v0 = vld [vmem:[%s2522_s9 + $0x6c] sm:$0xf]  ;;  %v291_v1 = vld [vmem:[%s2522_s9 + $0x70] sm:$0xf]  ;;  %v292_v2 = vld [vmem:[%s2522_s9 + $0x74] sm:$0xf]  ;;  %v1832_v31 = vcombine.low %v2612_v57, %v287_v58  ;;  %v1833_v32 = vcombine.low %v288_v59, %v289_v63 }
  0x1b   : > { %v1863_v3 = vcombine.low %v289_v63, %v290_v0  ;;  %v1864_v4 = vcombine.low %v291_v1, %v292_v2  ;;  %v293_v5 = vld [vmem:[%s2522_s9 + $0x78] sm:$0xf]  ;;  %v294_v6 = vld [vmem:[%s2522_s9 + $0x7c] sm:$0xf]  ;;  %v295_v7 = vld [vmem:[%s2522_s9 + $0x80] sm:$0xf] }
  0x1c   : > { %2142 = vmatmul.mubr.msk.bf16.gmra.mrb[4].mxu1 %vm489_vm0, %v1853_v24  ;;  %v296_v8 = vld [vmem:[%s2522_s9 + $0x84] sm:$0xf]  ;;  %v1865_v9 = vcombine.low %v293_v5, %v294_v6  ;;  %v297_v11 = vld [vmem:[%s2522_s9 + $0x88] sm:$0xf]  ;;  %v299_v13 = vld [vmem:[%s2522_s9 + $0x90] sm:$0xf] }
  0x1d   : > { %2145 = vmatprep.mubr.msk.bf16.mxu1 %vm489_vm0, %v1854_v25  ;;  %2194 = vmatmul.mubr.msk.bf16.gmra.mrb[4].mxu0 %vm489_vm0, %v2558_v26  ;;  %v1866_v10 = vcombine.low %v295_v7, %v296_v8  ;;  %v300_v14 = vld [vmem:[%s2522_s9 + $0x94] sm:$0xf]  ;;  %v302_v18 = vld [vmem:[%s2522_s9 + $0x9c] sm:$0xf]  ;;  %v303_v19 = vld [vmem:[%s2522_s9 + $0xa0] sm:$0xf] }
  0x1e   : > { %2197 = vmatprep.mubr.msk.bf16.mxu0 %vm489_vm0, %v2560_v27  ;;  %v1868_v16 = vcombine.low %v299_v13, %v300_v14  ;;  %v304_v20 = vld [vmem:[%s2522_s9 + $0xa4] sm:$0xf]  ;;  %v305_v23 = vld [vmem:[%s2522_s9 + $0xa8] sm:$0xf]  ;;  %v306_v24 = vld [vmem:[%s2522_s9 + $0xac] sm:$0xf]  ;;  %v1840_v40 = vcombine.low %v302_v18, %v303_v19 }
  0x1f   : > { %v1870_v22 = vcombine.low %v303_v19, %v304_v20  ;;  %v307_v25 = vld [vmem:[%s2522_s9 + $0xb0] sm:$0xf]  ;;  %v309_v29 = vld [vmem:[%s2522_s9 + $0xb8] sm:$0xf]  ;;  %v1841_v41 = vcombine.low %v304_v20, %v305_v23 }
  0x20   : > { %v1873_v30 = vcombine.low %v309_v29, %v2574_v35  ;;  %v1836_v35 = vcombine.low %v294_v6, %v295_v7  ;;  %v1842_v42 = vcombine.low %v306_v24, %v307_v25 }
  0x24   : > { %2146 = vmatmul.mubr.msk.bf16.gmra.mrb[8].mxu1 %vm489_vm0, %v1855_v33  ;;  %v1834_v33 = vcombine.low %v290_v0, %v291_v1 }
  0x25   : > { %2149 = vmatprep.mubr.msk.bf16.mxu1 %vm489_vm0, %v1856_v34  ;;  %2198 = vmatmul.mubr.msk.bf16.gmra.mrb[8].mxu0 %vm489_vm0, %v2576_v36  ;;  %v1835_v34 = vcombine.low %v292_v2, %v293_v5 }
  0x26   : > { %2201 = vmatprep.mubr.msk.bf16.mxu0 %vm489_vm0, %v2580_v38 }
  0x2c   : > { %2150 = vmatmul.mubr.msk.bf16.gmra.mrb[12].mxu1 %vm489_vm0, %v1857_v44 }
  0x2d   : > { %2153 = vmatprep.mubr.msk.bf16.mxu1 %vm489_vm0, %v1858_v45  ;;  %2202 = vmatmul.mubr.msk.bf16.gmra.mrb[12].mxu0 %vm489_vm0, %v1827_v46 }
  0x2e   : > { %2205 = vmatprep.mubr.msk.bf16.mxu0 %vm489_vm0, %v2595_v47 }
  0x34   : > { %2154 = vmatmul.mubr.msk.bf16.gmra.mrb[16].mxu1 %vm489_vm0, %v1859_v52 }
  0x35   : > { %2157 = vmatprep.mubr.msk.bf16.mxu1 %vm489_vm0, %v1860_v53  ;;  %2206 = vmatmul.mubr.msk.bf16.gmra.mrb[16].mxu0 %vm489_vm0, %v1829_v54 }
  0x36   : > { %2209 = vmatprep.mubr.msk.bf16.mxu0 %vm489_vm0, %v2606_v55 }
  0x3c   : > { %2158 = vmatmul.mubr.msk.bf16.gmra.mrb[20].mxu1 %vm489_vm0, %v1861_v60 }
  0x3d   : > { %2161 = vmatprep.mubr.msk.bf16.mxu1 %vm489_vm0, %v1862_v61  ;;  %2210 = vmatmul.mubr.msk.bf16.gmra.mrb[20].mxu0 %vm489_vm0, %v1831_v62 }
  0x3e   : > { %2241 = vmatprep.mubr.msk.bf16.mxu0 %vm489_vm0, %v2529_v12  ;;  %v298_v12 = vld [vmem:[%s2522_s9 + $0x8c] sm:$0xf] }
  0x3f   : > { %v1867_v15 = vcombine.low %v297_v11, %v298_v12  ;;  %v1838_v37 = vcombine.low %v298_v12, %v299_v13 }
  0x44   : > { %2162 = vmatmul.mubr.msk.bf16.gmra.mrb[24].mxu1 %vm489_vm0, %v1863_v3 }
  0x45   : > { %2165 = vmatprep.mubr.msk.bf16.mxu1 %vm489_vm0, %v1864_v4  ;;  %2242 = vmatmul.mubr.msk.bf16.vlgmr.msra.gmra.mrb[0].mxu0 %vm489_vm0, %v2541_v17  ;;  %v301_v17 = vld [vmem:[%s2522_s9 + $0x98] sm:$0xf]  ;;  %v2737_v4 = vld [vmem:[%s2913_s4] ss:$0 sm:$0xff] }
  0x46   : > { %2245 = vmatprep.mubr.msk.bf16.mxu0 %vm489_vm0, %v2558_v26  ;;  %v1869_v21 = vcombine.low %v301_v17, %v302_v18  ;;  %v308_v26 = vld [vmem:[%s2522_s9 + $0xb4] sm:$0xf] }
  0x47   : > { %v1872_v28 = vcombine.low %v307_v25, %v308_v26  ;;  %v1843_v43 = vcombine.low %v308_v26, %v309_v29 }
  0x4c   : > { %2166 = vmatmul.mubr.msk.bf16.gmra.mrb[28].mxu1 %vm489_vm0, %v1865_v9 }
  0x4d   : > { %2169 = vmatprep.mubr.msk.bf16.mxu1 %vm489_vm0, %v1866_v10  ;;  %2246 = vmatmul.mubr.msk.bf16.gmra.mrb[4].mxu0 %vm489_vm0, %v2560_v27  ;;  %v1871_v27 = vcombine.low %v305_v23, %v306_v24 }
  0x4e   : > { %2249 = vmatprep.mubr.msk.bf16.mxu0 %vm489_vm0, %v2576_v36  ;;  %v1837_v36 = vcombine.low %v296_v8, %v297_v11 }
  0x54   : > { %2170 = vmatmul.mubr.msk.bf16.gmra.mrb[32].mxu1 %vm489_vm0, %v1867_v15 }
  0x55   : > { %2173 = vmatprep.mubr.msk.bf16.mxu1 %vm489_vm0, %v1868_v16  ;;  %2250 = vmatmul.mubr.msk.bf16.gmra.mrb[8].mxu0 %vm489_vm0, %v2580_v38  ;;  %v1839_v38 = vcombine.low %v300_v14, %v301_v17 }
  0x56   : > { %2253 = vmatprep.mubr.msk.bf16.mxu0 %vm489_vm0, %v1827_v46 }
  0x5c   : > { %2174 = vmatmul.mubr.msk.bf16.gmra.mrb[36].mxu1 %vm489_vm0, %v1869_v21 }
  0x5d   : > { %2177 = vmatprep.mubr.msk.bf16.mxu1 %vm489_vm0, %v1870_v22  ;;  %2254 = vmatmul.mubr.msk.bf16.gmra.mrb[12].mxu0 %vm489_vm0, %v2595_v47 }
  0x5e   : > { %2257 = vmatprep.mubr.msk.bf16.mxu0 %vm489_vm0, %v1829_v54 }
  0x64   : > { %2178 = vmatmul.mubr.msk.bf16.gmra.mrb[40].mxu1 %vm489_vm0, %v1871_v27 }
  0x65   : > { %2181 = vmatprep.mubr.msk.bf16.mxu1 %vm489_vm0, %v1872_v28  ;;  %2258 = vmatmul.mubr.msk.bf16.gmra.mrb[16].mxu0 %vm489_vm0, %v2606_v55 }
  0x66   : > { %2261 = vmatprep.mubr.msk.bf16.mxu0 %vm489_vm0, %v1831_v62 }
  0x6c   : > { %2182 = vmatmul.mubr.msk.bf16.gmra.mrb[44].mxu1 %vm489_vm0, %v1873_v30 }
  0x6d   : > { %2213 = vmatprep.mubr.msk.bf16.mxu1 %vm489_vm0, %v1832_v31  ;;  %2262 = vmatmul.mubr.msk.bf16.gmra.mrb[20].mxu0 %vm489_vm0, %v1832_v31 }
  0x6e   : > { %2265 = vmatprep.mubr.msk.bf16.mxu0 %vm489_vm0, %v1833_v32 }
  0x74   : > { %2214 = vmatmul.mubr.msk.bf16.vlgmr.msra.gmra.mrb[24].mxu1 %vm489_vm0, %v1833_v32 }
  0x75   : > { %2217 = vmatprep.mubr.msk.bf16.mxu1 %vm489_vm0, %v1834_v33  ;;  %2266 = vmatmul.mubr.msk.bf16.gmra.mrb[24].mxu0 %vm489_vm0, %v1834_v33 }
  0x76   : > { %2269 = vmatprep.mubr.msk.bf16.mxu0 %vm489_vm0, %v1835_v34 }
  0x7c   : > { %2218 = vmatmul.mubr.msk.bf16.gmra.mrb[28].mxu1 %vm489_vm0, %v1835_v34 }
  0x7d   : > { %2221 = vmatprep.mubr.msk.bf16.mxu1 %vm489_vm0, %v1836_v35  ;;  %2270 = vmatmul.mubr.msk.bf16.gmra.mrb[28].mxu0 %vm489_vm0, %v1836_v35 }
  0x7e   : > { %2273 = vmatprep.mubr.msk.bf16.mxu0 %vm489_vm0, %v1837_v36 }
  0x84   : > { %2222 = vmatmul.mubr.msk.bf16.gmra.mrb[32].mxu1 %vm489_vm0, %v1837_v36 }
  0x85   : > { %2225 = vmatprep.mubr.msk.bf16.mxu1 %vm489_vm0, %v1838_v37  ;;  %2274 = vmatmul.mubr.msk.bf16.gmra.mrb[32].mxu0 %vm489_vm0, %v1838_v37 }
  0x86   : > { %2277 = vmatprep.mubr.msk.bf16.mxu0 %vm489_vm0, %v1839_v38 }
  0x8c   : > { %2226 = vmatmul.mubr.msk.bf16.gmra.mrb[36].mxu1 %vm489_vm0, %v1839_v38 }
  0x8d   : > { %2229 = vmatprep.mubr.msk.bf16.mxu1 %vm489_vm0, %v1840_v40  ;;  %2278 = vmatmul.mubr.msk.bf16.gmra.mrb[36].mxu0 %vm489_vm0, %v1840_v40 }
  0x8e   : > { %2281 = vmatprep.mubr.msk.bf16.mxu0 %vm489_vm0, %v1841_v41 }
  0x94   : > { %2230 = vmatmul.mubr.msk.bf16.gmra.mrb[40].mxu1 %vm489_vm0, %v1841_v41 }
  0x95   : > { %2233 = vmatprep.mubr.msk.bf16.mxu1 %vm489_vm0, %v1842_v42  ;;  %2282 = vmatmul.mubr.msk.bf16.gmra.mrb[40].mxu0 %vm489_vm0, %v1842_v42 }
  0x96   : > { %2285 = vmatprep.mubr.msk.bf16.mxu0 %vm489_vm0, %v1843_v43 }
  0x9c   : > { %2234 = vmatmul.mubr.msk.bf16.gmra.mrb[44].mxu1 %vm489_vm0, %v1843_v43 }
  0x9d   : > { %2286 = vmatmul.mubr.msk.bf16.gmra.mrb[44].mxu0 %vm489_vm0, %v2584_v39 }
  0xe7   : > { %v2139_v44 = vpop.f32.mrb[0].mxu1 }
  0xe8   : > { %v596_v45 = vpop.f32.mrb[1].mxu1 }
  0xe9   : > { %v2140_v46 = vpop.f32.mrb[2].mxu1 }
  0xea   : > { %v599_v47 = vpop.f32.mrb[3].mxu1 }
  0xef   : > { %v2143_v48 = vpop.f32.mrb[4].mxu1 }
  0xf0   : > { %v612_v49 = vpop.f32.mrb[5].mxu1 }
  0xf1   : > { %v2144_v50 = vpop.f32.mrb[6].mxu1 }
  0xf2   : > { %v615_v51 = vpop.f32.mrb[7].mxu1 }
  0xf7   : > { %v2702_v52 = vpop.f32.mrb[8].mxu1 }
  0xf8   : > { %v2704_v53 = vpop.f32.mrb[9].mxu1 }
  0xf9   : > { %v2706_v54 = vpop.f32.mrb[10].mxu1 }
  0xfa   : > { %v2708_v55 = vpop.f32.mrb[11].mxu1 }
  0xff   : > { %v2710_v56 = vpop.f32.mrb[12].mxu1 }
 0x100   : > { %v2712_v57 = vpop.f32.mrb[13].mxu1 }
 0x101   : > { %v2714_v39 = vpop.f32.mrb[14].mxu1 }
 0x102   : > { %v2716_v58 = vpop.f32.mrb[15].mxu1 }
 0x107   : > { %v2718_v59 = vpop.f32.mrb[16].mxu1 }
 0x108   : > { %v2720_v60 = vpop.f32.mrb[17].mxu1 }
 0x109   : > { %v2722_v61 = vpop.f32.mrb[18].mxu1 }
 0x10a   : > { %v2724_v62 = vpop.f32.mrb[19].mxu1 }
 0x10f   : > { %v2726_v63 = vpop.f32.mrb[20].mxu1 }
 0x110   : > { %v2728_v0 = vpop.f32.mrb[21].mxu1 }
 0x111   : > { %v2730_v1 = vpop.f32.mrb[22].mxu1 }
 0x112   : > { %v2732_v2 = vpop.f32.mrb[23].mxu1 }
 0x118   : > { %v2243_v3 = vpop.f32.mrb[0].mxu0 }
 0x119   : > { %v2293_v5 = vadd.f32 %v2243_v3, %v2139_v44  ;;  %v1148_v6 = vpop.f32.mrb[1].mxu0 }
 0x11a   : > { %v2294_v7 = vadd.f32 %v1148_v6, %v596_v45  ;;  %v2244_v8 = vpop.f32.mrb[2].mxu0 }
 0x11b   : > { %v1396_v9 = vadd.f32 %v2293_v5, %v2737_v4  ;;  %v2295_v10 = vadd.f32 %v2244_v8, %v2140_v46  ;;  %v1151_v11 = vpop.f32.mrb[3].mxu0 }
 0x11c   : > { %v1394_v12 = vadd.f32 %v2294_v7, %v2737_v4  ;;  %v2296_v13 = vadd.f32 %v1151_v11, %v599_v47 }
 0x11d   : > { %v1444_v14 = vmax.f32 %v1396_v9, 0.0  ;;  %v1397_v15 = vadd.f32 %v2295_v10, %v2737_v4 }
 0x11e   : > { %v1442_v16 = vmax.f32 %v1394_v12, 0.0  ;;  %v1395_v17 = vadd.f32 %v2296_v13, %v2737_v4 }
 0x11f   : > { %v2009_v18 = vpack.c.bf16 %v1444_v14, %v1444_v14  ;;  %v1445_v19 = vmax.f32 %v1397_v15, 0.0 }
 0x120   : > { %v2007_v20 = vpack.c.bf16 %v1442_v16, %v1442_v16  ;;  %v1443_v21 = vmax.f32 %v1395_v17, 0.0  ;;  %v2247_v22 = vpop.f32.mrb[4].mxu0 }
 0x121   : > { %1685 = vst.msk [vmem:[%s2747_s25 + $0x8] sm:$0xf] %vm1682_vm2, %v2009_v18  ;;  %v2010_v23 = vpack.c.bf16 %v1445_v19, %v1445_v19  ;;  %v2297_v24 = vadd.f32 %v2247_v22, %v2143_v48  ;;  %v1164_v25 = vpop.f32.mrb[5].mxu0 }
 0x122   : > { %1683 = vst.msk [vmem:[%s2747_s25] sm:$0xf] %vm1682_vm2, %v2007_v20  ;;  %v2008_v26 = vpack.c.bf16 %v1443_v21, %v1443_v21  ;;  %v2298_v27 = vadd.f32 %v1164_v25, %v612_v49  ;;  %v2248_v28 = vpop.f32.mrb[6].mxu0 }
 0x123   : > { %1686 = vst.msk [vmem:[%s2747_s25 + $0xc] sm:$0xf] %vm1682_vm2, %v2010_v23  ;;  %v1400_v29 = vadd.f32 %v2297_v24, %v2737_v4  ;;  %v2299_v30 = vadd.f32 %v2248_v28, %v2144_v50  ;;  %v1167_v31 = vpop.f32.mrb[7].mxu0 }
 0x124   : > { %1684 = vst.msk [vmem:[%s2747_s25 + $0x4] sm:$0xf] %vm1682_vm2, %v2008_v26  ;;  %v1398_v32 = vadd.f32 %v2298_v27, %v2737_v4  ;;  %v2300_v33 = vadd.f32 %v1167_v31, %v615_v51 }
 0x125   : > { %v1448_v34 = vmax.f32 %v1400_v29, 0.0  ;;  %v1401_v35 = vadd.f32 %v2299_v30, %v2737_v4 }
 0x126   : > { %v1446_v36 = vmax.f32 %v1398_v32, 0.0  ;;  %v1399_v37 = vadd.f32 %v2300_v33, %v2737_v4 }
 0x127   : > { %v2013_v38 = vpack.c.bf16 %v1448_v34, %v1448_v34  ;;  %v1449_v40 = vmax.f32 %v1401_v35, 0.0 }
 0x128   : > { %v2011_v41 = vpack.c.bf16 %v1446_v36, %v1446_v36  ;;  %v1447_v42 = vmax.f32 %v1399_v37, 0.0  ;;  %v2251_v43 = vpop.f32.mrb[8].mxu0 }
 0x129   : > { %1689 = vst.msk [vmem:[%s2747_s25 + $0x18] sm:$0xf] %vm1682_vm2, %v2013_v38  ;;  %v2014_v44 = vpack.c.bf16 %v1449_v40, %v1449_v40  ;;  %v2301_v45 = vadd.f32 %v2251_v43, %v2702_v52  ;;  %v1180_v46 = vpop.f32.mrb[9].mxu0 }
 0x12a   : > { %1687 = vst.msk [vmem:[%s2747_s25 + $0x10] sm:$0xf] %vm1682_vm2, %v2011_v41  ;;  %v2012_v47 = vpack.c.bf16 %v1447_v42, %v1447_v42  ;;  %v2302_v48 = vadd.f32 %v1180_v46, %v2704_v53  ;;  %v2252_v49 = vpop.f32.mrb[10].mxu0 }
 0x12b   : > { %1690 = vst.msk [vmem:[%s2747_s25 + $0x1c] sm:$0xf] %vm1682_vm2, %v2014_v44  ;;  %v1404_v50 = vadd.f32 %v2301_v45, %v2737_v4  ;;  %v2303_v51 = vadd.f32 %v2252_v49, %v2706_v54  ;;  %v1183_v3 = vpop.f32.mrb[11].mxu0 }
 0x12c   : > { %1688 = vst.msk [vmem:[%s2747_s25 + $0x14] sm:$0xf] %vm1682_vm2, %v2012_v47  ;;  %v1402_v52 = vadd.f32 %v2302_v48, %v2737_v4  ;;  %v2304_v5 = vadd.f32 %v1183_v3, %v2708_v55 }
 0x12d   : > { %v1452_v6 = vmax.f32 %v1404_v50, 0.0  ;;  %v1405_v7 = vadd.f32 %v2303_v51, %v2737_v4 }
 0x12e   : > { %v1450_v53 = vmax.f32 %v1402_v52, 0.0  ;;  %v1403_v8 = vadd.f32 %v2304_v5, %v2737_v4 }
 0x12f   : > { %v2017_v9 = vpack.c.bf16 %v1452_v6, %v1452_v6  ;;  %v1453_v10 = vmax.f32 %v1405_v7, 0.0 }
 0x130   : > { %v2015_v11 = vpack.c.bf16 %v1450_v53, %v1450_v53  ;;  %v1451_v54 = vmax.f32 %v1403_v8, 0.0  ;;  %v2255_v12 = vpop.f32.mrb[12].mxu0 }
 0x131   : > { %1693 = vst.msk [vmem:[%s2747_s25 + $0x28] sm:$0xf] %vm1682_vm2, %v2017_v9  ;;  %v2018_v13 = vpack.c.bf16 %v1453_v10, %v1453_v10  ;;  %v2305_v14 = vadd.f32 %v2255_v12, %v2710_v56  ;;  %v1196_v15 = vpop.f32.mrb[13].mxu0 }
 0x132   : > { %1691 = vst.msk [vmem:[%s2747_s25 + $0x20] sm:$0xf] %vm1682_vm2, %v2015_v11  ;;  %v2016_v55 = vpack.c.bf16 %v1451_v54, %v1451_v54  ;;  %v2306_v16 = vadd.f32 %v1196_v15, %v2712_v57  ;;  %v2256_v17 = vpop.f32.mrb[14].mxu0 }
 0x133   : > { %1694 = vst.msk [vmem:[%s2747_s25 + $0x2c] sm:$0xf] %vm1682_vm2, %v2018_v13  ;;  %v1408_v18 = vadd.f32 %v2305_v14, %v2737_v4  ;;  %v2307_v19 = vadd.f32 %v2256_v17, %v2714_v39  ;;  %v1199_v20 = vpop.f32.mrb[15].mxu0 }
 0x134   : > { %1692 = vst.msk [vmem:[%s2747_s25 + $0x24] sm:$0xf] %vm1682_vm2, %v2016_v55  ;;  %v1406_v56 = vadd.f32 %v2306_v16, %v2737_v4  ;;  %v2308_v21 = vadd.f32 %v1199_v20, %v2716_v58 }
 0x135   : > { %v1456_v22 = vmax.f32 %v1408_v18, 0.0  ;;  %v1409_v23 = vadd.f32 %v2307_v19, %v2737_v4 }
 0x136   : > { %v1454_v57 = vmax.f32 %v1406_v56, 0.0  ;;  %v1407_v24 = vadd.f32 %v2308_v21, %v2737_v4 }
 0x137   : > { %v2021_v25 = vpack.c.bf16 %v1456_v22, %v1456_v22  ;;  %v1457_v26 = vmax.f32 %v1409_v23, 0.0 }
 0x138   : > { %v2019_v27 = vpack.c.bf16 %v1454_v57, %v1454_v57  ;;  %v1455_v39 = vmax.f32 %v1407_v24, 0.0  ;;  %v2259_v28 = vpop.f32.mrb[16].mxu0 }
 0x139   : > { %1697 = vst.msk [vmem:[%s2747_s25 + $0x38] sm:$0xf] %vm1682_vm2, %v2021_v25  ;;  %v2022_v29 = vpack.c.bf16 %v1457_v26, %v1457_v26  ;;  %v2309_v30 = vadd.f32 %v2259_v28, %v2718_v59  ;;  %v1212_v31 = vpop.f32.mrb[17].mxu0 }
 0x13a   : > { %1695 = vst.msk [vmem:[%s2747_s25 + $0x30] sm:$0xf] %vm1682_vm2, %v2019_v27  ;;  %v2020_v58 = vpack.c.bf16 %v1455_v39, %v1455_v39  ;;  %v2310_v32 = vadd.f32 %v1212_v31, %v2720_v60  ;;  %v2260_v33 = vpop.f32.mrb[18].mxu0 }
 0x13b   : > { %1698 = vst.msk [vmem:[%s2747_s25 + $0x3c] sm:$0xf] %vm1682_vm2, %v2022_v29  ;;  %v1412_v34 = vadd.f32 %v2309_v30, %v2737_v4  ;;  %v2311_v35 = vadd.f32 %v2260_v33, %v2722_v61  ;;  %v1215_v36 = vpop.f32.mrb[19].mxu0 }
 0x13c   : > { %1696 = vst.msk [vmem:[%s2747_s25 + $0x34] sm:$0xf] %vm1682_vm2, %v2020_v58  ;;  %v1410_v59 = vadd.f32 %v2310_v32, %v2737_v4  ;;  %v2312_v37 = vadd.f32 %v1215_v36, %v2724_v62 }
 0x13d   : > { %v1460_v38 = vmax.f32 %v1412_v34, 0.0  ;;  %v1413_v40 = vadd.f32 %v2311_v35, %v2737_v4 }
 0x13e   : > { %v1458_v60 = vmax.f32 %v1410_v59, 0.0  ;;  %v1411_v41 = vadd.f32 %v2312_v37, %v2737_v4 }
 0x13f   : > { %v2025_v42 = vpack.c.bf16 %v1460_v38, %v1460_v38  ;;  %v1461_v43 = vmax.f32 %v1413_v40, 0.0 }
 0x140   : > { %v2023_v44 = vpack.c.bf16 %v1458_v60, %v1458_v60  ;;  %v1459_v61 = vmax.f32 %v1411_v41, 0.0  ;;  %v2263_v45 = vpop.f32.mrb[20].mxu0 }
 0x141   : > { %1701 = vst.msk [vmem:[%s2747_s25 + $0x48] sm:$0xf] %vm1682_vm2, %v2025_v42  ;;  %v2026_v46 = vpack.c.bf16 %v1461_v43, %v1461_v43  ;;  %v2313_v47 = vadd.f32 %v2263_v45, %v2726_v63  ;;  %v1228_v48 = vpop.f32.mrb[21].mxu0 }
 0x142   : > { %1699 = vst.msk [vmem:[%s2747_s25 + $0x40] sm:$0xf] %vm1682_vm2, %v2023_v44  ;;  %v2024_v62 = vpack.c.bf16 %v1459_v61, %v1459_v61  ;;  %v2314_v49 = vadd.f32 %v1228_v48, %v2728_v0  ;;  %v2264_v50 = vpop.f32.mrb[22].mxu0 }
 0x143   : > { %1702 = vst.msk [vmem:[%s2747_s25 + $0x4c] sm:$0xf] %vm1682_vm2, %v2026_v46  ;;  %v1416_v51 = vadd.f32 %v2313_v47, %v2737_v4  ;;  %v2315_v3 = vadd.f32 %v2264_v50, %v2730_v1  ;;  %v1231_v52 = vpop.f32.mrb[23].mxu0 }
 0x144   : > { %1700 = vst.msk [vmem:[%s2747_s25 + $0x44] sm:$0xf] %vm1682_vm2, %v2024_v62  ;;  %v1414_v5 = vadd.f32 %v2314_v49, %v2737_v4  ;;  %v2316_v63 = vadd.f32 %v1231_v52, %v2732_v2 }
 0x145   : > { %v1464_v6 = vmax.f32 %v1416_v51, 0.0  ;;  %v1417_v7 = vadd.f32 %v2315_v3, %v2737_v4 }
 0x146   : > { %v1462_v0 = vmax.f32 %v1414_v5, 0.0  ;;  %v1415_v53 = vadd.f32 %v2316_v63, %v2737_v4 }
 0x147   : > { %v2215_v8 = vpop.f32.mrb[24].mxu1  ;;  %v2029_v9 = vpack.c.bf16 %v1464_v6, %v1464_v6  ;;  %v1465_v10 = vmax.f32 %v1417_v7, 0.0 }
 0x148   : > { %v1000_v1 = vpop.f32.mrb[25].mxu1  ;;  %v2027_v11 = vpack.c.bf16 %v1462_v0, %v1462_v0  ;;  %v1463_v54 = vmax.f32 %v1415_v53, 0.0  ;;  %v2267_v12 = vpop.f32.mrb[24].mxu0 }
 0x149   : > { %v2216_v13 = vpop.f32.mrb[26].mxu1  ;;  %1705 = vst.msk [vmem:[%s2747_s25 + $0x58] sm:$0xf] %vm1682_vm2, %v2029_v9  ;;  %v2030_v2 = vpack.c.bf16 %v1465_v10, %v1465_v10  ;;  %v2317_v14 = vadd.f32 %v2267_v12, %v2215_v8  ;;  %v1244_v15 = vpop.f32.mrb[25].mxu0 }
 0x14a   : > { %v1003_v55 = vpop.f32.mrb[27].mxu1  ;;  %1703 = vst.msk [vmem:[%s2747_s25 + $0x50] sm:$0xf] %vm1682_vm2, %v2027_v11  ;;  %v2028_v16 = vpack.c.bf16 %v1463_v54, %v1463_v54  ;;  %v2318_v17 = vadd.f32 %v1244_v15, %v1000_v1  ;;  %v2268_v18 = vpop.f32.mrb[26].mxu0 }
 0x14b   : > { %1706 = vst.msk [vmem:[%s2747_s25 + $0x5c] sm:$0xf] %vm1682_vm2, %v2030_v2  ;;  %v1420_v19 = vadd.f32 %v2317_v14, %v2737_v4  ;;  %v2319_v20 = vadd.f32 %v2268_v18, %v2216_v13  ;;  %v1247_v56 = vpop.f32.mrb[27].mxu0 }
 0x14c   : > { %1704 = vst.msk [vmem:[%s2747_s25 + $0x54] sm:$0xf] %vm1682_vm2, %v2028_v16  ;;  %v1418_v21 = vadd.f32 %v2318_v17, %v2737_v4  ;;  %v2320_v22 = vadd.f32 %v1247_v56, %v1003_v55 }
 0x14d   : > { %v1468_v23 = vmax.f32 %v1420_v19, 0.0  ;;  %v1421_v57 = vadd.f32 %v2319_v20, %v2737_v4 }
 0x14e   : > { %v1466_v24 = vmax.f32 %v1418_v21, 0.0  ;;  %v1419_v25 = vadd.f32 %v2320_v22, %v2737_v4 }
 0x14f   : > { %v2219_v26 = vpop.f32.mrb[28].mxu1  ;;  %v2033_v27 = vpack.c.bf16 %v1468_v23, %v1468_v23  ;;  %v1469_v39 = vmax.f32 %v1421_v57, 0.0 }
 0x150   : > { %v1016_v28 = vpop.f32.mrb[29].mxu1  ;;  %v2031_v29 = vpack.c.bf16 %v1466_v24, %v1466_v24  ;;  %v1467_v30 = vmax.f32 %v1419_v25, 0.0  ;;  %v2271_v31 = vpop.f32.mrb[28].mxu0 }
 0x151   : > { %v2220_v58 = vpop.f32.mrb[30].mxu1  ;;  %1709 = vst.msk [vmem:[%s2747_s25 + $0x68] sm:$0xf] %vm1682_vm2, %v2033_v27  ;;  %v2034_v32 = vpack.c.bf16 %v1469_v39, %v1469_v39  ;;  %v2321_v33 = vadd.f32 %v2271_v31, %v2219_v26  ;;  %v1260_v34 = vpop.f32.mrb[29].mxu0 }
 0x152   : > { %v1019_v35 = vpop.f32.mrb[31].mxu1  ;;  %1707 = vst.msk [vmem:[%s2747_s25 + $0x60] sm:$0xf] %vm1682_vm2, %v2031_v29  ;;  %v2032_v36 = vpack.c.bf16 %v1467_v30, %v1467_v30  ;;  %v2322_v59 = vadd.f32 %v1260_v34, %v1016_v28  ;;  %v2272_v37 = vpop.f32.mrb[30].mxu0 }
 0x153   : > { %1710 = vst.msk [vmem:[%s2747_s25 + $0x6c] sm:$0xf] %vm1682_vm2, %v2034_v32  ;;  %v1424_v38 = vadd.f32 %v2321_v33, %v2737_v4  ;;  %v2323_v40 = vadd.f32 %v2272_v37, %v2220_v58  ;;  %v1263_v60 = vpop.f32.mrb[31].mxu0 }
 0x154   : > { %1708 = vst.msk [vmem:[%s2747_s25 + $0x64] sm:$0xf] %vm1682_vm2, %v2032_v36  ;;  %v1422_v41 = vadd.f32 %v2322_v59, %v2737_v4  ;;  %v2324_v42 = vadd.f32 %v1263_v60, %v1019_v35 }
 0x155   : > { %v1472_v43 = vmax.f32 %v1424_v38, 0.0  ;;  %v1425_v44 = vadd.f32 %v2323_v40, %v2737_v4 }
 0x156   : > { %v1470_v61 = vmax.f32 %v1422_v41, 0.0  ;;  %v1423_v45 = vadd.f32 %v2324_v42, %v2737_v4 }
 0x157   : > { %v2223_v46 = vpop.f32.mrb[32].mxu1  ;;  %v2037_v47 = vpack.c.bf16 %v1472_v43, %v1472_v43  ;;  %v1473_v48 = vmax.f32 %v1425_v44, 0.0 }
 0x158   : > { %v1032_v62 = vpop.f32.mrb[33].mxu1  ;;  %v2035_v49 = vpack.c.bf16 %v1470_v61, %v1470_v61  ;;  %v1471_v50 = vmax.f32 %v1423_v45, 0.0  ;;  %v2275_v51 = vpop.f32.mrb[32].mxu0 }
 0x159   : > { %v2224_v3 = vpop.f32.mrb[34].mxu1  ;;  %1713 = vst.msk [vmem:[%s2747_s25 + $0x78] sm:$0xf] %vm1682_vm2, %v2037_v47  ;;  %v2038_v52 = vpack.c.bf16 %v1473_v48, %v1473_v48  ;;  %v2325_v5 = vadd.f32 %v2275_v51, %v2223_v46  ;;  %v1276_v63 = vpop.f32.mrb[33].mxu0 }
 0x15a   : > { %v1035_v6 = vpop.f32.mrb[35].mxu1  ;;  %1711 = vst.msk [vmem:[%s2747_s25 + $0x70] sm:$0xf] %vm1682_vm2, %v2035_v49  ;;  %v2036_v7 = vpack.c.bf16 %v1471_v50, %v1471_v50  ;;  %v2326_v0 = vadd.f32 %v1276_v63, %v1032_v62  ;;  %v2276_v53 = vpop.f32.mrb[34].mxu0 }
 0x15b   : > { %1714 = vst.msk [vmem:[%s2747_s25 + $0x7c] sm:$0xf] %vm1682_vm2, %v2038_v52  ;;  %v1428_v8 = vadd.f32 %v2325_v5, %v2737_v4  ;;  %v2327_v9 = vadd.f32 %v2276_v53, %v2224_v3  ;;  %v1279_v10 = vpop.f32.mrb[35].mxu0 }
 0x15c   : > { %1712 = vst.msk [vmem:[%s2747_s25 + $0x74] sm:$0xf] %vm1682_vm2, %v2036_v7  ;;  %v1426_v1 = vadd.f32 %v2326_v0, %v2737_v4  ;;  %v2328_v11 = vadd.f32 %v1279_v10, %v1035_v6 }
 0x15d   : > { %v1476_v54 = vmax.f32 %v1428_v8, 0.0  ;;  %v1429_v12 = vadd.f32 %v2327_v9, %v2737_v4 }
 0x15e   : > { %v1474_v13 = vmax.f32 %v1426_v1, 0.0  ;;  %v1427_v2 = vadd.f32 %v2328_v11, %v2737_v4 }
 0x15f   : > { %v2227_v14 = vpop.f32.mrb[36].mxu1  ;;  %v2041_v15 = vpack.c.bf16 %v1476_v54, %v1476_v54  ;;  %v1477_v55 = vmax.f32 %v1429_v12, 0.0 }
 0x160   : > { %v1048_v16 = vpop.f32.mrb[37].mxu1  ;;  %v2039_v17 = vpack.c.bf16 %v1474_v13, %v1474_v13  ;;  %v1475_v18 = vmax.f32 %v1427_v2, 0.0  ;;  %v2279_v19 = vpop.f32.mrb[36].mxu0 }
 0x161   : > { %v2228_v20 = vpop.f32.mrb[38].mxu1  ;;  %1717 = vst.msk [vmem:[%s2747_s25 + $0x88] sm:$0xf] %vm1682_vm2, %v2041_v15  ;;  %v2042_v56 = vpack.c.bf16 %v1477_v55, %v1477_v55  ;;  %v2329_v21 = vadd.f32 %v2279_v19, %v2227_v14  ;;  %v1292_v22 = vpop.f32.mrb[37].mxu0 }
 0x162   : > { %v1051_v23 = vpop.f32.mrb[39].mxu1  ;;  %1715 = vst.msk [vmem:[%s2747_s25 + $0x80] sm:$0xf] %vm1682_vm2, %v2039_v17  ;;  %v2040_v57 = vpack.c.bf16 %v1475_v18, %v1475_v18  ;;  %v2330_v24 = vadd.f32 %v1292_v22, %v1048_v16  ;;  %v2280_v25 = vpop.f32.mrb[38].mxu0 }
 0x163   : > { %1718 = vst.msk [vmem:[%s2747_s25 + $0x8c] sm:$0xf] %vm1682_vm2, %v2042_v56  ;;  %v1432_v26 = vadd.f32 %v2329_v21, %v2737_v4  ;;  %v2331_v27 = vadd.f32 %v2280_v25, %v2228_v20  ;;  %v1295_v39 = vpop.f32.mrb[39].mxu0 }
 0x164   : > { %1716 = vst.msk [vmem:[%s2747_s25 + $0x84] sm:$0xf] %vm1682_vm2, %v2040_v57  ;;  %v1430_v28 = vadd.f32 %v2330_v24, %v2737_v4  ;;  %v2332_v29 = vadd.f32 %v1295_v39, %v1051_v23 }
 0x165   : > { %v1480_v30 = vmax.f32 %v1432_v26, 0.0  ;;  %v1433_v31 = vadd.f32 %v2331_v27, %v2737_v4 }
 0x166   : > { %v1478_v58 = vmax.f32 %v1430_v28, 0.0  ;;  %v1431_v32 = vadd.f32 %v2332_v29, %v2737_v4 }
 0x167   : > { %v2231_v33 = vpop.f32.mrb[40].mxu1  ;;  %v2045_v34 = vpack.c.bf16 %v1480_v30, %v1480_v30  ;;  %v1481_v35 = vmax.f32 %v1433_v31, 0.0 }
 0x168   : > { %v1064_v36 = vpop.f32.mrb[41].mxu1  ;;  %v2043_v59 = vpack.c.bf16 %v1478_v58, %v1478_v58  ;;  %v1479_v37 = vmax.f32 %v1431_v32, 0.0  ;;  %v2283_v38 = vpop.f32.mrb[40].mxu0 }
 0x169   : > { %v2232_v40 = vpop.f32.mrb[42].mxu1  ;;  %1721 = vst.msk [vmem:[%s2747_s25 + $0x98] sm:$0xf] %vm1682_vm2, %v2045_v34  ;;  %v2046_v60 = vpack.c.bf16 %v1481_v35, %v1481_v35  ;;  %v2333_v41 = vadd.f32 %v2283_v38, %v2231_v33  ;;  %v1308_v42 = vpop.f32.mrb[41].mxu0 }
 0x16a   : > { %v1067_v43 = vpop.f32.mrb[43].mxu1  ;;  %1719 = vst.msk [vmem:[%s2747_s25 + $0x90] sm:$0xf] %vm1682_vm2, %v2043_v59  ;;  %v2044_v44 = vpack.c.bf16 %v1479_v37, %v1479_v37  ;;  %v2334_v61 = vadd.f32 %v1308_v42, %v1064_v36  ;;  %v2284_v45 = vpop.f32.mrb[42].mxu0 }
 0x16b   : > { %1722 = vst.msk [vmem:[%s2747_s25 + $0x9c] sm:$0xf] %vm1682_vm2, %v2046_v60  ;;  %v1436_v46 = vadd.f32 %v2333_v41, %v2737_v4  ;;  %v2335_v47 = vadd.f32 %v2284_v45, %v2232_v40  ;;  %v1311_v48 = vpop.f32.mrb[43].mxu0 }
 0x16c   : > { %1720 = vst.msk [vmem:[%s2747_s25 + $0x94] sm:$0xf] %vm1682_vm2, %v2044_v44  ;;  %v1434_v62 = vadd.f32 %v2334_v61, %v2737_v4  ;;  %v2336_v49 = vadd.f32 %v1311_v48, %v1067_v43 }
 0x16d   : > { %v1484_v50 = vmax.f32 %v1436_v46, 0.0  ;;  %v1437_v51 = vadd.f32 %v2335_v47, %v2737_v4 }
 0x16e   : > { %v1482_v3 = vmax.f32 %v1434_v62, 0.0  ;;  %v1435_v52 = vadd.f32 %v2336_v49, %v2737_v4 }
 0x16f   : > { %v2235_v5 = vpop.f32.mrb[44].mxu1  ;;  %v2049_v63 = vpack.c.bf16 %v1484_v50, %v1484_v50  ;;  %v1485_v6 = vmax.f32 %v1437_v51, 0.0 }
 0x170   : > { %v1080_v7 = vpop.f32.mrb[45].mxu1  ;;  %v2047_v0 = vpack.c.bf16 %v1482_v3, %v1482_v3  ;;  %v1483_v53 = vmax.f32 %v1435_v52, 0.0  ;;  %v2287_v8 = vpop.f32.mrb[44].mxu0 }
 0x171   : > { %v2236_v9 = vpop.f32.mrb[46].mxu1  ;;  %1725 = vst.msk [vmem:[%s2747_s25 + $0xa8] sm:$0xf] %vm1682_vm2, %v2049_v63  ;;  %v2050_v10 = vpack.c.bf16 %v1485_v6, %v1485_v6  ;;  %v2337_v1 = vadd.f32 %v2287_v8, %v2235_v5  ;;  %v1324_v11 = vpop.f32.mrb[45].mxu0 }
 0x172   : > { %v1083_v54 = vpop.f32.mrb[47].mxu1  ;;  %1723 = vst.msk [vmem:[%s2747_s25 + $0xa0] sm:$0xf] %vm1682_vm2, %v2047_v0  ;;  %v2048_v12 = vpack.c.bf16 %v1483_v53, %v1483_v53  ;;  %v2338_v13 = vadd.f32 %v1324_v11, %v1080_v7  ;;  %v2288_v2 = vpop.f32.mrb[46].mxu0 }
 0x173   : > { %1726 = vst.msk [vmem:[%s2747_s25 + $0xac] sm:$0xf] %vm1682_vm2, %v2050_v10  ;;  %v1440_v14 = vadd.f32 %v2337_v1, %v2737_v4  ;;  %v2339_v15 = vadd.f32 %v2288_v2, %v2236_v9  ;;  %v1327_v55 = vpop.f32.mrb[47].mxu0 }
 0x174   : > { %1724 = vst.msk [vmem:[%s2747_s25 + $0xa4] sm:$0xf] %vm1682_vm2, %v2048_v12  ;;  %v1438_v16 = vadd.f32 %v2338_v13, %v2737_v4  ;;  %v2340_v17 = vadd.f32 %v1327_v55, %v1083_v54 }
 0x175   : > { %v1488_v18 = vmax.f32 %v1440_v14, 0.0  ;;  %v1441_v19 = vadd.f32 %v2339_v15, %v2737_v4 }
 0x176   : > { %v1486_v20 = vmax.f32 %v1438_v16, 0.0  ;;  %v1439_v56 = vadd.f32 %v2340_v17, %v2737_v4 }
 0x177   : > { %v2053_v21 = vpack.c.bf16 %v1488_v18, %v1488_v18  ;;  %v1489_v22 = vmax.f32 %v1441_v19, 0.0 }
 0x178   : > { %v2051_v23 = vpack.c.bf16 %v1486_v20, %v1486_v20  ;;  %v1487_v57 = vmax.f32 %v1439_v56, 0.0 }
 0x179   : > { %1729 = vst.msk [vmem:[%s2747_s25 + $0xb8] sm:$0xf] %vm1682_vm2, %v2053_v21  ;;  %v2054_v24 = vpack.c.bf16 %v1489_v22, %v1489_v22 }
 0x17a   : > { %1727 = vst.msk [vmem:[%s2747_s25 + $0xb0] sm:$0xf] %vm1682_vm2, %v2051_v23  ;;  %v2052_v25 = vpack.c.bf16 %v1487_v57, %v1487_v57 }
 0x17b   : > { %1730 = vst.msk [vmem:[%s2747_s25 + $0xbc] sm:$0xf] %vm1682_vm2, %v2054_v24 }
 0x17c   : > { %1728 = vst.msk [vmem:[%s2747_s25 + $0xb4] sm:$0xf] %vm1682_vm2, %v2052_v25 }
 0x17d PF: > { %s15_s18 = sadd.s32 1, %s2459_s18  }
 0x17e   : > { %p12_p5 = scmp.ge.s32.totalorder %s15_s18, 4  }
 0x180   :  { %14 = sbr.rel (!%p12_p5) target bundleno = 1 (0x1), region = 78 }

</bundles_post_ra>
